<compile_context>
chip_gen: v5e
topology: v5e:2x2
jax: 0.10.0
libtpu: 0.0.40
codegen_flags: <defaults>
</compile_context>

<pallas_src>
import math

import jax
import jax.numpy as jnp
from jax.experimental import pallas as pl
from jax.experimental.pallas import tpu as pltpu

BN_EPS = 1e-5     # PyTorch BatchNorm1d default
TILE_M = 128      # batch tile (MXU / sublane aligned on v5e / v6e / v7x)
K_PAD = 128       # pad input_size (=32) up to a full MXU contraction depth
OUT_PAD = 128     # pad output_size (=6) to a lane-dense 128-wide store


def _snn_kernel(x_ref, w1_ref, b1_ref, w2_ref, b2_ref, w3_ref, b3_ref, o_ref):
    # BatchNorm already folded into w2/b2 and w3/b3 on the host.
    # Dropout(0.5) is the identity in eval mode.
    x = x_ref[...]
    h1 = jnp.dot(x, w1_ref[...], preferred_element_type=jnp.float32) + b1_ref[...]
    h1 = jnp.maximum(h1, 0.0).astype(w2_ref.dtype)
    h2 = jnp.dot(h1, w2_ref[...], preferred_element_type=jnp.float32) + b2_ref[...]
    h2 = jnp.maximum(h2, 0.0).astype(w3_ref.dtype)
    out = jnp.dot(h2, w3_ref[...], preferred_element_type=jnp.float32) + b3_ref[...]
    o_ref[...] = out.astype(o_ref.dtype)


def prepare_params(params, input_size, compute_dtype=jnp.bfloat16):
    """Fold BN into the following linears, zero-pad K/out dims, cast weights to bf16."""
    assert input_size <= K_PAD
    h1 = params["w1"].shape[1]
    h2 = params["w2"].shape[1]
    out_size = params["w3"].shape[1]
    assert out_size <= OUT_PAD

    # BatchNorm as affine: bn(h) = h * s + t
    s1 = params["g1"] * jax.lax.rsqrt(params["v1"] + BN_EPS)     # (1, h1)
    t1 = params["beta1"] - params["m1"] * s1
    s2 = params["g2"] * jax.lax.rsqrt(params["v2"] + BN_EPS)     # (1, h2)
    t2 = params["beta2"] - params["m2"] * s2

    # Fold BN1 into hidden_layer1 and BN2 into hidden_layer2:
    #   bn1(h1) @ W2 + b2 == h1 @ (s1^T * W2) + (t1 @ W2 + b2)
    w2f = params["w2"] * s1.reshape(h1, 1)
    b2f = t1 @ params["w2"] + params["b2"]
    w3f = params["w3"] * s2.reshape(h2, 1)
    b3f = t2 @ params["w3"] + params["b3"]

    # Zero-pad the contraction dim of w1 (exact: x is zero-padded identically).
    w1p = jnp.zeros((K_PAD, h1), jnp.float32).at[:input_size, :].set(params["w1"])

    # Zero-pad the output dim for unmasked, lane-dense stores.
    w3p = jnp.zeros((h2, OUT_PAD), jnp.float32).at[:, :out_size].set(w3f)
    b3p = jnp.zeros((1, OUT_PAD), jnp.float32).at[:, :out_size].set(b3f)

    return dict(
        w1=w1p.astype(compute_dtype), b1=params["b1"].astype(jnp.float32),
        w2=w2f.astype(compute_dtype), b2=b2f.astype(jnp.float32),
        w3=w3p.astype(compute_dtype), b3=b3p.astype(jnp.float32),
        out_size=out_size,
    )


def complex_snn_forward(x, prep):
    """x: (B, input_size) float32 spike train. Returns (B, output_size) float32."""
    B, in_size = x.shape
    out_size = prep["out_size"]
    compute_dtype = prep["w1"].dtype

    b_pad = pl.cdiv(B, TILE_M) * TILE_M
    xp = jnp.zeros((b_pad, K_PAD), compute_dtype).at[:B, :in_size].set(
        x.astype(compute_dtype))

    def resident(shape):
        # Weights / biases: same block for every grid step -> stay VMEM-resident.
        return pl.BlockSpec(shape, lambda i: (0,) * len(shape))

    out = pl.pallas_call(
        _snn_kernel,
        out_shape=jax.ShapeDtypeStruct((b_pad, OUT_PAD), jnp.float32),
        grid=(b_pad // TILE_M,),
        in_specs=[
            pl.BlockSpec((TILE_M, K_PAD), lambda i: (i, 0)),
            resident(prep["w1"].shape), resident(prep["b1"].shape),
            resident(prep["w2"].shape), resident(prep["b2"].shape),
            resident(prep["w3"].shape), resident(prep["b3"].shape),
        ],
        out_specs=pl.BlockSpec((TILE_M, OUT_PAD), lambda i: (i, 0)),
        compiler_params=pltpu.CompilerParams(
            dimension_semantics=("parallel",)),
    )(xp, prep["w1"], prep["b1"], prep["w2"], prep["b2"],
      prep["w3"], prep["b3"])

    return out[:B, :out_size]


def init_params(key, input_size, hidden1, hidden2, output_size):
    """Deterministic init mimicking PyTorch Linear default (uniform +/- 1/sqrt(fan_in))."""
    ks = jax.random.split(key, 6)

    def linear(kw, kb, fan_in, fan_out):
        bound = 1.0 / math.sqrt(fan_in)
        w = jax.random.uniform(kw, (fan_in, fan_out), jnp.float32, -bound, bound)
        b = jax.random.uniform(kb, (1, fan_out), jnp.float32, -bound, bound)
        return w, b

    w1, b1 = linear(ks[0], ks[1], input_size, hidden1)
    w2, b2 = linear(ks[2], ks[3], hidden1, hidden2)
    w3, b3 = linear(ks[4], ks[5], hidden2, output_size)

    # BatchNorm1d defaults: gamma=1, beta=0, running_mean=0, running_var=1
    def bn(n):
        return (jnp.ones((1, n), jnp.float32), jnp.zeros((1, n), jnp.float32),
                jnp.zeros((1, n), jnp.float32), jnp.ones((1, n), jnp.float32))

    g1, beta1, m1, v1 = bn(hidden1)
    g2, beta2, m2, v2 = bn(hidden2)

    return dict(w1=w1, b1=b1, g1=g1, beta1=beta1, m1=m1, v1=v1,
                w2=w2, b2=b2, g2=g2, beta2=beta2, m2=m2, v2=v2,
                w3=w3, b3=b3)


def poisson_encoder(key, input_data, time=8, dt=1.0, encoding_rate=20.0):
    """JAX version of the reference poisson_encoder (small `time` for the demo)."""
    spikes = jax.random.uniform(key, input_data.shape) < (encoding_rate * dt / 1000.0)
    spike_train = jnp.tile(spikes, (1, time))  # == torch .repeat(1, time)
    return spike_train.astype(jnp.float32)


def reference_forward(x, p):
    """Pure-JAX f32 reference with the original (un-folded) eval-mode semantics."""
    h = jnp.maximum(x @ p["w1"] + p["b1"], 0.0)
    h = (h - p["m1"]) / jnp.sqrt(p["v1"] + BN_EPS) * p["g1"] + p["beta1"]
    h = jnp.maximum(h @ p["w2"] + p["b2"], 0.0)
    h = (h - p["m2"]) / jnp.sqrt(p["v2"] + BN_EPS) * p["g2"] + p["beta2"]
    return h @ p["w3"] + p["b3"]


# TODO(synk): training-mode Dropout(0.5) (random mask + 2x scale) and BatchNorm1d
# batch-statistics path are not implemented; this kernel is the eval-mode forward.

if __name__ == "__main__":
    key = jax.random.PRNGKey(0)
    k_data, k_enc, k_params = jax.random.split(key, 3)

    # Small demo shapes: batch=2, 4 raw features, time=8 -> input_size=32
    batch = 2
    n_features = 4
    time_steps = 8
    hidden_size1 = 256
    hidden_size2 = 128
    output_size = 6

    raw = jax.random.uniform(k_data, (batch, n_features), jnp.float32)
    x = poisson_encoder(k_enc, raw, time=time_steps)   # (2, 32)
    input_size = x.shape[1]

    params = init_params(k_params, input_size, hidden_size1, hidden_size2, output_size)
    prep = prepare_params(params, input_size)

    out = complex_snn_forward(x, prep)
    out = jax.block_until_ready(out)

    ref = reference_forward(x, params)
    assert out.shape == (batch, output_size)
    # bf16 matmul inputs with f32 accumulation vs. full-f32 reference -> loose tol.
    assert jnp.allclose(out, ref, atol=2e-2, rtol=2e-2)

    print("KERNEL_OK")
</pallas_src>

<mosaic_0001>
module attributes {stable_mosaic.version = 11 : i64} {
  func.func @_snn_kernel(%arg0: i32, %arg1: memref<128x128xbf16, #tpu.memory_space<vmem>>, %arg2: memref<128x256xbf16, #tpu.memory_space<vmem>>, %arg3: memref<1x256xf32, #tpu.memory_space<vmem>>, %arg4: memref<256x128xbf16, #tpu.memory_space<vmem>>, %arg5: memref<1x128xf32, #tpu.memory_space<vmem>>, %arg6: memref<128x128xbf16, #tpu.memory_space<vmem>>, %arg7: memref<1x128xf32, #tpu.memory_space<vmem>>, %arg8: memref<128x128xf32, #tpu.memory_space<vmem>>) attributes {dimension_semantics = [#tpu.dimension_semantics<parallel>], iteration_bounds = array<i64: 1>, scalar_prefetch = 0 : i64, scratch_operands = 0 : i64, tpu.core_type = #tpu.core_type<tc>, window_params = [{transform_indices = @transform_0, window_bounds = array<i64: 128, 128>}, {pipeline_mode = #tpu.pipeline_mode<synchronous>, transform_indices = @transform_1, window_bounds = array<i64: 128, 256>}, {pipeline_mode = #tpu.pipeline_mode<synchronous>, transform_indices = @transform_2, window_bounds = array<i64: 1, 256>}, {pipeline_mode = #tpu.pipeline_mode<synchronous>, transform_indices = @transform_3, window_bounds = array<i64: 256, 128>}, {pipeline_mode = #tpu.pipeline_mode<synchronous>, transform_indices = @transform_4, window_bounds = array<i64: 1, 128>}, {pipeline_mode = #tpu.pipeline_mode<synchronous>, transform_indices = @transform_5, window_bounds = array<i64: 128, 128>}, {pipeline_mode = #tpu.pipeline_mode<synchronous>, transform_indices = @transform_6, window_bounds = array<i64: 1, 128>}, {transform_indices = @transform_7, window_bounds = array<i64: 128, 128>}]} {
    %c0 = arith.constant 0 : index
    %c0_0 = arith.constant 0 : index
    %0 = vector.load %arg1[%c0, %c0_0] : memref<128x128xbf16, #tpu.memory_space<vmem>>, vector<128x128xbf16>
    %c0_1 = arith.constant 0 : index
    %c0_2 = arith.constant 0 : index
    %1 = vector.load %arg2[%c0_1, %c0_2] : memref<128x256xbf16, #tpu.memory_space<vmem>>, vector<128x256xbf16>
    %cst = arith.constant dense<0.000000e+00> : vector<128x256xf32>
    %2 = tpu.matmul %0, %1, %cst {dimension_numbers = #tpu.dot_dimension_numbers<[1], [0], [0], [1], [0, 0, 1, 1], [], []>} : vector<128x128xbf16>, vector<128x256xbf16>, vector<128x256xf32> -> vector<128x256xf32>
    %c0_3 = arith.constant 0 : index
    %c0_4 = arith.constant 0 : index
    %3 = vector.load %arg3[%c0_3, %c0_4] : memref<1x256xf32, #tpu.memory_space<vmem>>, vector<1x256xf32>
    %4 = vector.broadcast %3 : vector<1x256xf32> to vector<128x256xf32>
    %5 = arith.addf %2, %4 : vector<128x256xf32>
    %cst_5 = arith.constant 0.000000e+00 : f32
    %6 = vector.broadcast %cst_5 : f32 to vector<128x256xf32>
    %7 = arith.maximumf %5, %6 : vector<128x256xf32>
    %8 = arith.truncf %7 : vector<128x256xf32> to vector<128x256xbf16>
    %c0_6 = arith.constant 0 : index
    %c0_7 = arith.constant 0 : index
    %9 = vector.load %arg4[%c0_6, %c0_7] : memref<256x128xbf16, #tpu.memory_space<vmem>>, vector<256x128xbf16>
    %cst_8 = arith.constant dense<0.000000e+00> : vector<128x128xf32>
    %10 = tpu.matmul %8, %9, %cst_8 {dimension_numbers = #tpu.dot_dimension_numbers<[1], [0], [0], [1], [0, 0, 1, 1], [], []>} : vector<128x256xbf16>, vector<256x128xbf16>, vector<128x128xf32> -> vector<128x128xf32>
    %c0_9 = arith.constant 0 : index
    %c0_10 = arith.constant 0 : index
    %11 = vector.load %arg5[%c0_9, %c0_10] : memref<1x128xf32, #tpu.memory_space<vmem>>, vector<1x128xf32>
    %12 = vector.broadcast %11 : vector<1x128xf32> to vector<128x128xf32>
    %13 = arith.addf %10, %12 : vector<128x128xf32>
    %cst_11 = arith.constant 0.000000e+00 : f32
    %14 = vector.broadcast %cst_11 : f32 to vector<128x128xf32>
    %15 = arith.maximumf %13, %14 : vector<128x128xf32>
    %16 = arith.truncf %15 : vector<128x128xf32> to vector<128x128xbf16>
    %c0_12 = arith.constant 0 : index
    %c0_13 = arith.constant 0 : index
    %17 = vector.load %arg6[%c0_12, %c0_13] : memref<128x128xbf16, #tpu.memory_space<vmem>>, vector<128x128xbf16>
    %cst_14 = arith.constant dense<0.000000e+00> : vector<128x128xf32>
    %18 = tpu.matmul %16, %17, %cst_14 {dimension_numbers = #tpu.dot_dimension_numbers<[1], [0], [0], [1], [0, 0, 1, 1], [], []>} : vector<128x128xbf16>, vector<128x128xbf16>, vector<128x128xf32> -> vector<128x128xf32>
    %c0_15 = arith.constant 0 : index
    %c0_16 = arith.constant 0 : index
    %19 = vector.load %arg7[%c0_15, %c0_16] : memref<1x128xf32, #tpu.memory_space<vmem>>, vector<1x128xf32>
    %20 = vector.broadcast %19 : vector<1x128xf32> to vector<128x128xf32>
    %21 = arith.addf %18, %20 : vector<128x128xf32>
    %c0_17 = arith.constant 0 : index
    %c0_18 = arith.constant 0 : index
    %22 = vector.load %arg8[%c0_17, %c0_18] : memref<128x128xf32, #tpu.memory_space<vmem>>, vector<128x128xf32>
    tpu.vector_store %arg8[%c0_17, %c0_18], %21 {strides = array<i32>} : memref<128x128xf32, #tpu.memory_space<vmem>>, vector<128x128xf32>,
    return
  }
  func.func @transform_0(%arg0: i32) -> (i32, i32) {
    %c0_i32 = arith.constant 0 : i32
    %c0_i32_0 = arith.constant 0 : i32
    return %arg0, %c0_i32 : i32, i32
  }
  func.func @transform_1(%arg0: i32) -> (i32, i32) {
    %c0_i32 = arith.constant 0 : i32
    %c0_i32_0 = arith.constant 0 : i32
    %c0_i32_1 = arith.constant 0 : i32
    return %c0_i32, %c0_i32_0 : i32, i32
  }
  func.func @transform_2(%arg0: i32) -> (i32, i32) {
    %c0_i32 = arith.constant 0 : i32
    %c0_i32_0 = arith.constant 0 : i32
    %c0_i32_1 = arith.constant 0 : i32
    return %c0_i32, %c0_i32_0 : i32, i32
  }
  func.func @transform_3(%arg0: i32) -> (i32, i32) {
    %c0_i32 = arith.constant 0 : i32
    %c0_i32_0 = arith.constant 0 : i32
    %c0_i32_1 = arith.constant 0 : i32
    return %c0_i32, %c0_i32_0 : i32, i32
  }
  func.func @transform_4(%arg0: i32) -> (i32, i32) {
    %c0_i32 = arith.constant 0 : i32
    %c0_i32_0 = arith.constant 0 : i32
    %c0_i32_1 = arith.constant 0 : i32
    return %c0_i32, %c0_i32_0 : i32, i32
  }
  func.func @transform_5(%arg0: i32) -> (i32, i32) {
    %c0_i32 = arith.constant 0 : i32
    %c0_i32_0 = arith.constant 0 : i32
    %c0_i32_1 = arith.constant 0 : i32
    return %c0_i32, %c0_i32_0 : i32, i32
  }
  func.func @transform_6(%arg0: i32) -> (i32, i32) {
    %c0_i32 = arith.constant 0 : i32
    %c0_i32_0 = arith.constant 0 : i32
    %c0_i32_1 = arith.constant 0 : i32
    return %c0_i32, %c0_i32_0 : i32, i32
  }
  func.func @transform_7(%arg0: i32) -> (i32, i32) {
    %c0_i32 = arith.constant 0 : i32
    %c0_i32_0 = arith.constant 0 : i32
    return %arg0, %c0_i32 : i32, i32
  }
}

</mosaic_0001>

<bundles_post_ra>
// kernel: tpu_custom_call.1
= control target key start
LH: loop header
LB: loop body
LE: loop exit
PB: predicated region body
PF: predicated region fallthrough
CT: control target
= control target key end

     0   :  { %12 = vsyncpa [#allocation3], 0  ;;  %s1385_s0 = inlined_call_operand.hbm [shape: bf16[128,128], index: 0, kind: input, shape index: {}]   ;;  %s1386_s1 = inlined_call_operand.hbm [shape: bf16[128,256], index: 1, kind: input, shape index: {}]   ;;  %s1387_s2 = inlined_call_operand.hbm [shape: f32[1,256], index: 2, kind: input, shape index: {}]   ;;  %s1388_s3 = inlined_call_operand.hbm [shape: bf16[256,128], index: 3, kind: input, shape index: {}]   ;;  %s1389_s4 = inlined_call_operand.vmem [shape: f32[1,128], index: 4, kind: input, shape index: {}]   ;;  %s1390_s5 = inlined_call_operand.hbm [shape: bf16[128,128], index: 5, kind: input, shape index: {}]   ;;  %s1391_s6 = inlined_call_operand.vmem [shape: f32[1,128], index: 6, kind: input, shape index: {}]   ;;  %s1392_s7 = inlined_call_operand.hbm [shape: f32[128,128], index: 7, kind: output, shape index: {}]  }
   0x1   :  { %13 = vsyncpa [#allocation6], 0 }
   0x2   :  { %14 = vsyncpa [#allocation9], 0  ;;  %s33_s26 = sshll.u32 %s1386_s1, 4  ;;  %s34_s26 = int_to_ptr.hbm [resolvable:$true] %s33_s26 }
   0x3   :  { %15 = vsyncpa [#allocation4], 0  ;;  %s1251_s27 = smov [#allocation5]   ;;  %s1252_s29 = smov 128  }
   0x4   :  { %s35_s28 = sshll.u32 %s1251_s27, 4  ;;  %s1253_s30 = smov 8   ;;  %s36_s28 = int_to_ptr.vmem [resolvable:$true] %s35_s28 }
   0x5   :  { %41 = dma.hbm_to_vmem [thread:$0]  %s34_s26, 2048, %s36_s28, [#allocation6], %s1252_s29, %s1252_s29, %s1253_s30  }
   0x6   :  { %s57_s10 = sshll.u32 %s1388_s3, 4  ;;  %s1254_s11 = smov [#allocation8]   ;;  %s58_s10 = int_to_ptr.hbm [resolvable:$true] %s57_s10 }
   0x7   :  { %s59_s12 = sshll.u32 %s1254_s11, 4  ;;  %s20_s14 = sshll.u32 %s1385_s0, 4  ;;  %s60_s12 = int_to_ptr.vmem [resolvable:$true] %s59_s12  ;;  %s21_s14 = int_to_ptr.hbm [resolvable:$true] %s20_s14 }
   0x8   :  { %s1255_s15 = smov 64   ;;  %s1256_s16 = smov 4  }
   0x9   :  { %65 = dma.hbm_to_vmem [thread:$0]  %s58_s10, 2048, %s60_s12, [#allocation9], %s1255_s15, %s1255_s15, %s1256_s16  }
   0xa   :  { %s47_s19 = sshll.u32 %s1387_s2, 4  ;;  %s1257_s20 = smov [#allocation2]   ;;  %s48_s19 = int_to_ptr.hbm [resolvable:$true] %s47_s19 }
   0xb   :  { %s22_s21 = sshll.u32 %s1257_s20, 4  ;;  %s1258_s3 = smov [#allocation7]   ;;  %s23_s21 = int_to_ptr.vmem [resolvable:$true] %s22_s21 }
   0xc   :  { %28 = dma.hbm_to_vmem [thread:$0]  %s21_s14, 1024, %s23_s21, [#allocation3], %s1255_s15, %s1255_s15, %s1256_s16  }
   0xd   :  { %s49_s22 = sshll.u32 %s1258_s3, 4  ;;  %s72_s0 = sshll.u32 %s1390_s5, 4  ;;  %s50_s22 = int_to_ptr.vmem [resolvable:$true] %s49_s22  ;;  %s73_s0 = int_to_ptr.hbm [resolvable:$true] %s72_s0 }
   0xe   :  { %52 = dma.hbm_to_vmem [thread:$0]  %s48_s19, 32, %s50_s22, [#allocation6]  }
   0xf   :  { %s1259_s25 = smov [#allocation10]  }
  0x10   :  { %s74_s26 = sshll.u32 %s1259_s25, 4  ;;  %s75_s26 = int_to_ptr.vmem [resolvable:$true] %s74_s26 }
  0x11   :  { %80 = dma.hbm_to_vmem [thread:$0]  %s73_s0, 1024, %s75_s26, [#allocation9], %s1255_s15, %s1255_s15, %s1256_s16  }
  0x12   :  { %1243 = dma.done.wait [#allocation3], 1024  }
  0x13   :  { %1244 = vsyncadd [#allocation3], 4294966272 }
  0x14   :  { %1245 = dma.done.wait [#allocation6], 2080  }
  0x15   :  { %1246 = vsyncadd [#allocation6], 4294965216 }
  0x16   :  { %1247 = dma.done.wait [#allocation9], 3072  }
  0x17   :  { %1248 = vsyncadd [#allocation9], 4294964224  ;;  %v913_v0 = vld [vmem:[#allocation5 + $0x70] sm:$0xf]  ;;  %v1038_v1 = vld [vmem:[#allocation5 + $0x74] sm:$0xf0] }
  0x18   :  { %v905_v2 = vld [vmem:[#allocation5 + $0x60] sm:$0xf]  ;;  %v914_v3 = vor.u32 %v1038_v1, %v913_v0  ;;  %v1036_v4 = vld [vmem:[#allocation5 + $0x64] sm:$0xf0]  ;;  %v897_v6 = vld [vmem:[#allocation5 + $0x50] sm:$0xf] }
  0x19   :  { %v906_v5 = vor.u32 %v1036_v4, %v905_v2  ;;  %v1034_v7 = vld [vmem:[#allocation5 + $0x54] sm:$0xf0]  ;;  %v889_v9 = vld [vmem:[#allocation5 + $0x40] sm:$0xf]  ;;  %v1032_v10 = vld [vmem:[#allocation5 + $0x44] sm:$0xf0] }
  0x1a   :  { %269 = vmatpush.bf16.msra.mxu0 %v914_v3  ;;  %1063 = vmatpush.bf16.msra.mxu1 %v914_v3  ;;  %v898_v8 = vor.u32 %v1034_v7, %v897_v6  ;;  %v890_v11 = vor.u32 %v1032_v10, %v889_v9  ;;  %v881_v12 = vld [vmem:[#allocation5 + $0x30] sm:$0xf]  ;;  %v1030_v13 = vld [vmem:[#allocation5 + $0x34] sm:$0xf0]  ;;  %v873_v15 = vld [vmem:[#allocation5 + $0x20] sm:$0xf] }
  0x1b   :  { %1064 = vmatpush.bf16.msra.mxu2 %v914_v3  ;;  %1065 = vmatpush.bf16.msra.mxu3 %v914_v3  ;;  %v882_v14 = vor.u32 %v1030_v13, %v881_v12  ;;  %v1028_v16 = vld [vmem:[#allocation5 + $0x24] sm:$0xf0]  ;;  %v865_v18 = vld [vmem:[#allocation5 + $0x10] sm:$0xf]  ;;  %v1026_v19 = vld [vmem:[#allocation5 + $0x14] sm:$0xf0] }
  0x1c   :  { %v874_v17 = vor.u32 %v1028_v16, %v873_v15  ;;  %v866_v20 = vor.u32 %v1026_v19, %v865_v18  ;;  %v857_v21 = vld [vmem:[#allocation5] sm:$0xf]  ;;  %v1024_v22 = vld [vmem:[#allocation5 + $0x4] sm:$0xf0]  ;;  %v1037_v23 = vld [vmem:[#allocation5 + $0x74] sm:$0xf] }
  0x1d   :  { %v915_v24 = vld [vmem:[#allocation5 + $0x78] sm:$0xf0]  ;;  %v858_v25 = vor.u32 %v1024_v22, %v857_v21  ;;  %v1035_v27 = vld [vmem:[#allocation5 + $0x64] sm:$0xf]  ;;  %v907_v28 = vld [vmem:[#allocation5 + $0x68] sm:$0xf0] }
  0x1e   :  { %270 = vmatpush.bf16.msra.mxu0 %v906_v5  ;;  %1066 = vmatpush.bf16.msra.mxu1 %v906_v5  ;;  %v918_v26 = vor.u32 %v1037_v23, %v915_v24  ;;  %v1015_v29 = vld [vmem:[#allocation2] sm:$0xff]  ;;  %v1017_v30 = vld [vmem:[#allocation2 + $0x10] sm:$0xff]  ;;  %v910_v31 = vor.u32 %v1035_v27, %v907_v28  ;;  %v899_v33 = vld [vmem:[#allocation5 + $0x58] sm:$0xf0]  ;;  %s808_s10 = sshll.u32 %s1392_s7, 4  ;;  %s809_s10 = int_to_ptr.hbm [resolvable:$true] %s808_s10 }
  0x1f   :  { %1067 = vmatpush.bf16.msra.mxu2 %v906_v5  ;;  %1068 = vmatpush.bf16.msra.mxu3 %v906_v5  ;;  %v1033_v32 = vld [vmem:[#allocation5 + $0x54] sm:$0xf]  ;;  %v1031_v35 = vld [vmem:[#allocation5 + $0x44] sm:$0xf]  ;;  %v891_v36 = vld [vmem:[#allocation5 + $0x48] sm:$0xf0] }
  0x20   :  { %v902_v34 = vor.u32 %v1033_v32, %v899_v33  ;;  %v894_v37 = vor.u32 %v1031_v35, %v891_v36  ;;  %v1029_v38 = vld [vmem:[#allocation5 + $0x34] sm:$0xf]  ;;  %v883_v39 = vld [vmem:[#allocation5 + $0x38] sm:$0xf0]  ;;  %v1027_v41 = vld [vmem:[#allocation5 + $0x24] sm:$0xf] }
  0x21   :  { %v886_v40 = vor.u32 %v1029_v38, %v883_v39  ;;  %v875_v42 = vld [vmem:[#allocation5 + $0x28] sm:$0xf0]  ;;  %v1018_v44 = vld [vmem:[#allocation2 + $0x18] sm:$0xff]  ;;  %v1025_v46 = vld [vmem:[#allocation5 + $0x14] sm:$0xf] }
  0x22   :  { %271 = vmatpush.bf16.msra.mxu0 %v898_v8  ;;  %1069 = vmatpush.bf16.msra.mxu1 %v898_v8  ;;  %v1016_v43 = vld [vmem:[#allocation2 + $0x8] sm:$0xff]  ;;  %v878_v45 = vor.u32 %v1027_v41, %v875_v42  ;;  %v867_v47 = vld [vmem:[#allocation5 + $0x18] sm:$0xf0]  ;;  %v1023_v49 = vld [vmem:[#allocation5 + $0x4] sm:$0xf] }
  0x23   :  { %1070 = vmatpush.bf16.msra.mxu2 %v898_v8  ;;  %1071 = vmatpush.bf16.msra.mxu3 %v898_v8  ;;  %v870_v48 = vor.u32 %v1025_v46, %v867_v47  ;;  %v859_v50 = vld [vmem:[#allocation5 + $0x8] sm:$0xf0]  ;;  %v1019_v52 = vld [vmem:[#allocation2 + $0x20] sm:$0xff]  ;;  %v1021_v54 = vld [vmem:[#allocation2 + $0x30] sm:$0xff] }
  0x24   :  { %v862_v51 = vor.u32 %v1023_v49, %v859_v50  ;;  %v1020_v53 = vld [vmem:[#allocation2 + $0x28] sm:$0xff]  ;;  %v1046_v55 = vld [vmem:[#allocation8 + $0x38] sm:$0xff]  ;;  %v1045_v56 = vld [vmem:[#allocation8 + $0x30] sm:$0xff] }
  0x25   :  { %v1022_v57 = vld [vmem:[#allocation2 + $0x38] sm:$0xff]  ;;  %v1044_v58 = vld [vmem:[#allocation8 + $0x28] sm:$0xff]  ;;  %v1043_v59 = vld [vmem:[#allocation8 + $0x20] sm:$0xff] }
  0x26   :  { %272 = vmatpush.bf16.msra.mxu0 %v890_v11  ;;  %1072 = vmatpush.bf16.msra.mxu1 %v890_v11  ;;  %v1042_v60 = vld [vmem:[#allocation8 + $0x18] sm:$0xff]  ;;  %v1041_v61 = vld [vmem:[#allocation8 + $0x10] sm:$0xff]  ;;  %v1040_v62 = vld [vmem:[#allocation8 + $0x8] sm:$0xff] }
  0x27   :  { %1073 = vmatpush.bf16.msra.mxu2 %v890_v11  ;;  %1074 = vmatpush.bf16.msra.mxu3 %v890_v11  ;;  %v1039_v63 = vld [vmem:[#allocation8] sm:$0xff]  ;;  %v1054_v0 = vld [vmem:[#allocation8 + $0x78] sm:$0xff]  ;;  %v1053_v1 = vld [vmem:[#allocation8 + $0x70] sm:$0xff] }
  0x28   :  { %v1052_v2 = vld [vmem:[#allocation8 + $0x68] sm:$0xff]  ;;  %v1051_v3 = vld [vmem:[#allocation8 + $0x60] sm:$0xff]  ;;  %v1050_v4 = vld [vmem:[#allocation8 + $0x58] sm:$0xff] }
  0x29   :  { %v135_v5 = vld [vmem:[#allocation7] sm:$0x3]  ;;  %v1049_v8 = vld [vmem:[#allocation8 + $0x50] sm:$0xff]  ;;  %v1048_v10 = vld [vmem:[#allocation8 + $0x48] sm:$0xff] }
  0x2a   :  { %273 = vmatpush.bf16.msra.mxu0 %v882_v14  ;;  %1075 = vmatpush.bf16.msra.mxu1 %v882_v14  ;;  %v1319_v9 = vperm.slane %v135_v5, 0  ;;  %v1047_v16 = vld [vmem:[#allocation8 + $0x40] sm:$0xff] }
  0x2b   :  { %1076 = vmatpush.bf16.msra.mxu2 %v882_v14  ;;  %1077 = vmatpush.bf16.msra.mxu3 %v882_v14 }
  0x2e   :  { %274 = vmatpush.bf16.msra.mxu0 %v874_v17  ;;  %1078 = vmatpush.bf16.msra.mxu1 %v874_v17 }
  0x2f   :  { %1079 = vmatpush.bf16.msra.mxu2 %v874_v17  ;;  %1080 = vmatpush.bf16.msra.mxu3 %v874_v17 }
  0x32   :  { %275 = vmatpush.bf16.msra.mxu0 %v866_v20  ;;  %1081 = vmatpush.bf16.msra.mxu1 %v866_v20 }
  0x33   :  { %1082 = vmatpush.bf16.msra.mxu2 %v866_v20  ;;  %1083 = vmatpush.bf16.msra.mxu3 %v866_v20 }
  0x36   :  { %276 = vmatpush.bf16.msra.mxu0 %v858_v25  ;;  %1084 = vmatpush.bf16.msra.mxu1 %v858_v25 }
  0x37   :  { %1085 = vmatpush.bf16.msra.mxu2 %v858_v25  ;;  %1086 = vmatpush.bf16.msra.mxu3 %v858_v25 }
  0x39   :  { %277 = vmatmul.bf16.vlgmr.msra.gmra.mxu0 %v1015_v29  ;;  %287 = vmatmul.bf16.vlgmr.msra.gmra.mxu1 %v1017_v30 }
  0x3a   :  { %318 = vmatpush.bf16.msrb.mxu1 %v918_v26  ;;  %297 = vmatmul.bf16.vlgmr.msra.gmra.mxu2 %v1019_v52 }
  0x3b   :  { %307 = vmatmul.bf16.vlgmr.msra.gmra.mxu3 %v1021_v54  ;;  %547 = vmatpush.bf16.msrb.mxu2 %v1046_v55 }
  0x3c   :  { %596 = vmatpush.bf16.msrb.mxu3 %v1054_v0 }
  0x3e   :  { %319 = vmatpush.bf16.msrb.mxu1 %v910_v31 }
  0x3f   :  { %548 = vmatpush.bf16.msrb.mxu2 %v1045_v56 }
  0x40   :  { %597 = vmatpush.bf16.msrb.mxu3 %v1053_v1 }
  0x42   :  { %320 = vmatpush.bf16.msrb.mxu1 %v902_v34 }
  0x43   :  { %549 = vmatpush.bf16.msrb.mxu2 %v1044_v58 }
  0x44   :  { %598 = vmatpush.bf16.msrb.mxu3 %v1052_v2 }
  0x46   :  { %321 = vmatpush.bf16.msrb.mxu1 %v894_v37 }
  0x47   :  { %550 = vmatpush.bf16.msrb.mxu2 %v1043_v59 }
  0x48   :  { %599 = vmatpush.bf16.msrb.mxu3 %v1051_v3 }
  0x49   :  { %282 = vmatmul.bf16.gmra.mxu0 %v1016_v43  ;;  %292 = vmatmul.bf16.gmra.mxu1 %v1018_v44 }
  0x4a   :  { %322 = vmatpush.bf16.msrb.mxu1 %v886_v40  ;;  %302 = vmatmul.bf16.gmra.mxu2 %v1020_v53 }
  0x4b   :  { %312 = vmatmul.bf16.gmra.mxu3 %v1022_v57  ;;  %551 = vmatpush.bf16.msrb.mxu2 %v1042_v60 }
  0x4c   :  { %600 = vmatpush.bf16.msrb.mxu3 %v1050_v4 }
  0x4e   :  { %323 = vmatpush.bf16.msrb.mxu1 %v878_v45 }
  0x4f   :  { %552 = vmatpush.bf16.msrb.mxu2 %v1041_v61 }
  0x50   :  { %601 = vmatpush.bf16.msrb.mxu3 %v1049_v8 }
  0x52   :  { %324 = vmatpush.bf16.msrb.mxu1 %v870_v48 }
  0x53   :  { %553 = vmatpush.bf16.msrb.mxu2 %v1040_v62 }
  0x54   :  { %602 = vmatpush.bf16.msrb.mxu3 %v1048_v10 }
  0x56   :  { %325 = vmatpush.bf16.msrb.mxu1 %v862_v51 }
  0x57   :  { %554 = vmatpush.bf16.msrb.mxu2 %v1039_v63 }
  0x58   :  { %603 = vmatpush.bf16.msrb.mxu3 %v1047_v16 }
  0x59   :  { %326 = vmatmul.bf16.vlgmr.msrb.gmra.mxu1 %v1015_v29  ;;  %v1325_v29 = vperm.slane %v135_v5, 1 }
  0x69   :  { %331 = vmatmul.bf16.gmra.mxu1 %v1016_v43 }
  0x79   :  { %336 = vmatmul.bf16.gmra.mxu1 %v1017_v30 }
  0x89   :  { %341 = vmatmul.bf16.gmra.mxu1 %v1018_v44 }
  0x99   :  { %346 = vmatmul.bf16.gmra.mxu1 %v1019_v52 }
  0xa9   :  { %351 = vmatmul.bf16.gmra.mxu1 %v1020_v53 }
  0xb6   :  { %v278_v6 = vpop.f32.mrf.mxu0  ;;  %v288_v7 = vpop.f32.mrf.mxu1 }
  0xb7   :  { %v279_v11 = vadd.f32 %v278_v6, %v1319_v9  ;;  %v289_v31 = vadd.f32 %v288_v7, %v1319_v9 }
  0xb9   :  { %356 = vmatmul.bf16.gmra.mxu1 %v1021_v54  ;;  %v367_v14 = vmax.f32 %v279_v11, 0.0  ;;  %v375_v36 = vmax.f32 %v289_v31, 0.0 }
  0xbd   :  { %v298_v42 = vpop.f32.mrf.mxu2 }
  0xbe   :  { %v280_v12 = vpop.f32.mrf.mxu0  ;;  %v290_v13 = vpop.f32.mrf.mxu1  ;;  %v299_v56 = vadd.f32 %v298_v42, %v1319_v9 }
  0xbf   :  { %v281_v15 = vadd.f32 %v280_v12, %v1319_v9  ;;  %v291_v30 = vadd.f32 %v290_v13, %v1319_v9  ;;  %v308_v6 = vpop.f32.mrf.mxu3 }
  0xc0   :  { %v383_v60 = vmax.f32 %v299_v56, 0.0 }
  0xc1   :  { %v369_v17 = vmax.f32 %v281_v15, 0.0  ;;  %v377_v34 = vmax.f32 %v291_v30, 0.0 }
  0xc3   :  { %v399_v18 = vpack.c.bf16 %v369_v17, %v367_v14  ;;  %v403_v40 = vpack.c.bf16 %v377_v34, %v375_v36 }
  0xc5   :  { %555 = vmatmul.bf16.vlgmr.msrb.gmra.mxu2 %v399_v18  ;;  %v300_v52 = vpop.f32.mrf.mxu2 }
  0xc6   :  { %v283_v19 = vpop.f32.mrf.mxu0  ;;  %v293_v20 = vpop.f32.mrf.mxu1 }
  0xc7   :  { %v284_v21 = vadd.f32 %v283_v19, %v1319_v9  ;;  %v294_v44 = vadd.f32 %v293_v20, %v1319_v9  ;;  %v310_v18 = vpop.f32.mrf.mxu3 }
  0xc9   :  { %361 = vmatmul.bf16.gmra.mxu1 %v1022_v57  ;;  %v371_v24 = vmax.f32 %v284_v21, 0.0  ;;  %v379_v49 = vmax.f32 %v294_v44, 0.0  ;;  %v301_v57 = vadd.f32 %v300_v52, %v1319_v9  ;;  %v309_v21 = vadd.f32 %v308_v6, %v1319_v9 }
  0xcb   :  { %v385_v61 = vmax.f32 %v301_v57, 0.0  ;;  %v1058_v57 = vld [vmem:[#allocation10 + $0x18] sm:$0xff] }
  0xcd   :  { %v303_v58 = vpop.f32.mrf.mxu2  ;;  %v407_v2 = vpack.c.bf16 %v385_v61, %v383_v60  ;;  %v1057_v60 = vld [vmem:[#allocation10 + $0x10] sm:$0xff]  ;;  %v1056_v61 = vld [vmem:[#allocation10 + $0x8] sm:$0xff] }
  0xce   :  { %v285_v22 = vpop.f32.mrf.mxu0  ;;  %v295_v23 = vpop.f32.mrf.mxu1  ;;  %v304_v7 = vadd.f32 %v303_v58, %v1319_v9 }
  0xcf   :  { %v286_v25 = vadd.f32 %v285_v22, %v1319_v9  ;;  %v296_v43 = vadd.f32 %v295_v23, %v1319_v9  ;;  %v311_v22 = vadd.f32 %v310_v18, %v1319_v9  ;;  %v313_v23 = vpop.f32.mrf.mxu3 }
  0xd0   :  { %v387_v11 = vmax.f32 %v304_v7, 0.0  ;;  %v314_v36 = vadd.f32 %v313_v23, %v1319_v9 }
  0xd1   :  { %v373_v26 = vmax.f32 %v286_v25, 0.0  ;;  %v381_v47 = vmax.f32 %v296_v43, 0.0  ;;  %v391_v25 = vmax.f32 %v309_v21, 0.0 }
  0xd3   :  { %v401_v27 = vpack.c.bf16 %v373_v26, %v371_v24  ;;  %v405_v53 = vpack.c.bf16 %v381_v47, %v379_v49  ;;  %v393_v26 = vmax.f32 %v311_v22, 0.0  ;;  %v1062_v47 = vld [vmem:[#allocation10 + $0x38] sm:$0xff]  ;;  %v1061_v49 = vld [vmem:[#allocation10 + $0x30] sm:$0xff] }
  0xd4   :  { %737 = vmatpush.bf16.msrb.mxu0 %v1062_v47 }
  0xd5   :  { %560 = vmatmul.bf16.gmra.mxu2 %v401_v27  ;;  %v305_v5 = vpop.f32.mrf.mxu2 }
  0xd6   :  { %v327_v28 = vpop.f32.mrf.mxu1  ;;  %v306_v8 = vadd.f32 %v305_v5, %v1319_v9 }
  0xd7   :  { %v328_v32 = vadd.f32 %v327_v28, %v1325_v29 }
  0xd8   :  { %v389_v12 = vmax.f32 %v306_v8, 0.0  ;;  %738 = vmatpush.bf16.msrb.mxu0 %v1061_v49 }
  0xd9   :  { %v368_v37 = vmax.f32 %v328_v32, 0.0  ;;  %v411_v32 = vpack.c.bf16 %v393_v26, %v391_v25 }
  0xda   :  { %v409_v17 = vpack.c.bf16 %v389_v12, %v387_v11 }
  0xde   :  { %v329_v33 = vpop.f32.mrf.mxu1 }
  0xdf   :  { %v330_v35 = vadd.f32 %v329_v33, %v1325_v29 }
  0xe1   :  { %v370_v38 = vmax.f32 %v330_v35, 0.0  ;;  %v315_v35 = vpop.f32.mrf.mxu3 }
  0xe3   :  { %v400_v39 = vpack.c.bf16 %v370_v38, %v368_v37  ;;  %v316_v37 = vadd.f32 %v315_v35, %v1319_v9 }
  0xe5   :  { %565 = vmatmul.bf16.gmra.mxu2 %v403_v40  ;;  %604 = vmatmul.bf16.vlgmr.msrb.gmra.mxu3 %v400_v39  ;;  %v395_v39 = vmax.f32 %v314_v36, 0.0  ;;  %v397_v40 = vmax.f32 %v316_v37, 0.0 }
  0xe6   :  { %v332_v41 = vpop.f32.mrf.mxu1 }
  0xe7   :  { %v333_v45 = vadd.f32 %v332_v41, %v1325_v29 }
  0xe9   :  { %v372_v50 = vmax.f32 %v333_v45, 0.0  ;;  %v413_v45 = vpack.c.bf16 %v397_v40, %v395_v39 }
  0xee   :  { %v334_v46 = vpop.f32.mrf.mxu1 }
  0xef   :  { %v335_v48 = vadd.f32 %v334_v46, %v1325_v29 }
  0xf1   :  { %v374_v51 = vmax.f32 %v335_v48, 0.0 }
  0xf3   :  { %v402_v54 = vpack.c.bf16 %v374_v51, %v372_v50  ;;  %v1060_v50 = vld [vmem:[#allocation10 + $0x28] sm:$0xff] }
  0xf4   :  { %739 = vmatpush.bf16.msrb.mxu0 %v1060_v50 }
  0xf5   :  { %570 = vmatmul.bf16.gmra.mxu2 %v405_v53  ;;  %609 = vmatmul.bf16.gmra.mxu3 %v402_v54 }
  0xf6   :  { %v337_v55 = vpop.f32.mrf.mxu1 }
  0xf7   :  { %v338_v59 = vadd.f32 %v337_v55, %v1325_v29  ;;  %v1059_v55 = vld [vmem:[#allocation10 + $0x20] sm:$0xff] }
  0xf8   :  { %740 = vmatpush.bf16.msrb.mxu0 %v1059_v55 }
  0xf9   :  { %v376_v0 = vmax.f32 %v338_v59, 0.0 }
  0xfc   :  { %741 = vmatpush.bf16.msrb.mxu0 %v1058_v57 }
  0xfe   :  { %v339_v62 = vpop.f32.mrf.mxu1 }
  0xff   :  { %v340_v63 = vadd.f32 %v339_v62, %v1325_v29 }
 0x100   :  { %742 = vmatpush.bf16.msrb.mxu0 %v1057_v60 }
 0x101   :  { %v378_v1 = vmax.f32 %v340_v63, 0.0 }
 0x103   :  { %v404_v3 = vpack.c.bf16 %v378_v1, %v376_v0 }
 0x104   :  { %743 = vmatpush.bf16.msrb.mxu0 %v1056_v61 }
 0x105   :  { %614 = vmatmul.bf16.gmra.mxu3 %v404_v3  ;;  %575 = vmatmul.bf16.gmra.mxu2 %v407_v2 }
 0x106   :  { %v342_v4 = vpop.f32.mrf.mxu1 }
 0x107   :  { %v343_v10 = vadd.f32 %v342_v4, %v1325_v29  ;;  %v1055_v4 = vld [vmem:[#allocation10] sm:$0xff] }
 0x108   :  { %744 = vmatpush.bf16.msrb.mxu0 %v1055_v4 }
 0x109   :  { %v380_v15 = vmax.f32 %v343_v10, 0.0  ;;  %v1358_v10 = vld [vmem:[%s1389_s4] ss:$0 sm:$0xff] }
 0x10e   :  { %v344_v13 = vpop.f32.mrf.mxu1 }
 0x10f   :  { %v345_v14 = vadd.f32 %v344_v13, %v1325_v29 }
 0x111   :  { %v382_v16 = vmax.f32 %v345_v14, 0.0 }
 0x113   :  { %v406_v19 = vpack.c.bf16 %v382_v16, %v380_v15 }
 0x115   :  { %619 = vmatmul.bf16.gmra.mxu3 %v406_v19  ;;  %580 = vmatmul.bf16.gmra.mxu2 %v409_v17 }
 0x116   :  { %v347_v20 = vpop.f32.mrf.mxu1 }
 0x117   :  { %v348_v24 = vadd.f32 %v347_v20, %v1325_v29 }
 0x119   :  { %v384_v30 = vmax.f32 %v348_v24, 0.0 }
 0x11e   :  { %v349_v27 = vpop.f32.mrf.mxu1 }
 0x11f   :  { %v350_v28 = vadd.f32 %v349_v27, %v1325_v29 }
 0x121   :  { %v386_v31 = vmax.f32 %v350_v28, 0.0 }
 0x123   :  { %v408_v33 = vpack.c.bf16 %v386_v31, %v384_v30 }
 0x125   :  { %624 = vmatmul.bf16.gmra.mxu3 %v408_v33  ;;  %585 = vmatmul.bf16.gmra.mxu2 %v411_v32 }
 0x126   :  { %v352_v34 = vpop.f32.mrf.mxu1 }
 0x127   :  { %v353_v38 = vadd.f32 %v352_v34, %v1325_v29 }
 0x129   :  { %v388_v43 = vmax.f32 %v353_v38, 0.0 }
 0x12e   :  { %v354_v41 = vpop.f32.mrf.mxu1 }
 0x12f   :  { %v355_v42 = vadd.f32 %v354_v41, %v1325_v29 }
 0x131   :  { %v390_v44 = vmax.f32 %v355_v42, 0.0 }
 0x133   :  { %v410_v46 = vpack.c.bf16 %v390_v44, %v388_v43 }
 0x135   :  { %629 = vmatmul.bf16.gmra.mxu3 %v410_v46  ;;  %590 = vmatmul.bf16.gmra.mxu2 %v413_v45 }
 0x136   :  { %v357_v48 = vpop.f32.mrf.mxu1 }
 0x137   :  { %v358_v9 = vadd.f32 %v357_v48, %v1325_v29 }
 0x139   :  { %v392_v53 = vmax.f32 %v358_v9, 0.0 }
 0x13e   :  { %v359_v51 = vpop.f32.mrf.mxu1 }
 0x13f   :  { %v360_v52 = vadd.f32 %v359_v51, %v1325_v29 }
 0x141   :  { %v394_v54 = vmax.f32 %v360_v52, 0.0 }
 0x143   :  { %v412_v56 = vpack.c.bf16 %v394_v54, %v392_v53 }
 0x145   :  { %634 = vmatmul.bf16.gmra.mxu3 %v412_v56 }
 0x146   :  { %v362_v58 = vpop.f32.mrf.mxu1 }
 0x147   :  { %v363_v62 = vadd.f32 %v362_v58, %v1325_v29 }
 0x148   :  { %v556_v59 = vpop.f32.mrf.mxu2 }
 0x149   :  { %v396_v1 = vmax.f32 %v363_v62, 0.0  ;;  %v557_v11 = vadd.f32 %v1358_v10, %v556_v59 }
 0x14e   :  { %v364_v63 = vpop.f32.mrf.mxu1 }
 0x14f   :  { %v365_v0 = vadd.f32 %v364_v63, %v1325_v29 }
 0x150   :  { %v558_v3 = vpop.f32.mrf.mxu2 }
 0x151   :  { %v398_v2 = vmax.f32 %v365_v0, 0.0  ;;  %v559_v29 = vadd.f32 %v1358_v10, %v558_v3 }
 0x153   :  { %v414_v5 = vpack.c.bf16 %v398_v2, %v396_v1 }
 0x155   :  { %639 = vmatmul.bf16.gmra.mxu3 %v414_v5 }
 0x158   :  { %v561_v6 = vpop.f32.mrf.mxu2 }
 0x159   :  { %v562_v21 = vadd.f32 %v1358_v10, %v561_v6 }
 0x160   :  { %v563_v7 = vpop.f32.mrf.mxu2 }
 0x161   :  { %v564_v22 = vadd.f32 %v1358_v10, %v563_v7 }
 0x168   :  { %v605_v8 = vpop.f32.mrf.mxu3  ;;  %v566_v13 = vpop.f32.mrf.mxu2 }
 0x169   :  { %v606_v12 = vadd.f32 %v605_v8, %v557_v11  ;;  %v567_v32 = vadd.f32 %v1358_v10, %v566_v13 }
 0x16b   :  { %v645_v16 = vmax.f32 %v606_v12, 0.0 }
 0x170   :  { %v607_v14 = vpop.f32.mrf.mxu3  ;;  %v568_v20 = vpop.f32.mrf.mxu2 }
 0x171   :  { %v608_v15 = vadd.f32 %v607_v14, %v559_v29  ;;  %v569_v34 = vadd.f32 %v1358_v10, %v568_v20 }
 0x173   :  { %v646_v17 = vmax.f32 %v608_v15, 0.0 }
 0x175   :  { %v661_v18 = vpack.c.bf16 %v646_v17, %v645_v16 }
 0x177   :  { %745 = vmatmul.bf16.vlgmr.msrb.gmra.mxu0 %v661_v18 }
 0x178   :  { %v610_v19 = vpop.f32.mrf.mxu3  ;;  %v571_v28 = vpop.f32.mrf.mxu2 }
 0x179   :  { %v611_v23 = vadd.f32 %v610_v19, %v562_v21  ;;  %v572_v43 = vadd.f32 %v1358_v10, %v571_v28 }
 0x17b   :  { %v647_v26 = vmax.f32 %v611_v23, 0.0 }
 0x180   :  { %v612_v24 = vpop.f32.mrf.mxu3  ;;  %v573_v33 = vpop.f32.mrf.mxu2 }
 0x181   :  { %v613_v25 = vadd.f32 %v612_v24, %v564_v22  ;;  %v574_v44 = vadd.f32 %v1358_v10, %v573_v33 }
 0x183   :  { %v648_v27 = vmax.f32 %v613_v25, 0.0 }
 0x185   :  { %v662_v30 = vpack.c.bf16 %v648_v27, %v647_v26 }
 0x187   :  { %750 = vmatmul.bf16.gmra.mxu0 %v662_v30 }
 0x188   :  { %v615_v31 = vpop.f32.mrf.mxu3  ;;  %v576_v41 = vpop.f32.mrf.mxu2 }
 0x189   :  { %v616_v35 = vadd.f32 %v615_v31, %v567_v32  ;;  %v577_v53 = vadd.f32 %v1358_v10, %v576_v41  ;;  %v1098_v31 = vld [vmem:[%s1391_s6] ss:$0 sm:$0xff]  ;;  %s1260_s6 = smov [#allocation11]  }
 0x18a   :  { %s806_s28 = sshll.u32 %s1260_s6, 4  ;;  %s807_s28 = int_to_ptr.vmem [resolvable:$true] %s806_s28 }
 0x18b   :  { %v649_v38 = vmax.f32 %v616_v35, 0.0 }
 0x190   :  { %v617_v36 = vpop.f32.mrf.mxu3  ;;  %v578_v46 = vpop.f32.mrf.mxu2 }
 0x191   :  { %v618_v37 = vadd.f32 %v617_v36, %v569_v34  ;;  %v579_v54 = vadd.f32 %v1358_v10, %v578_v46 }
 0x193   :  { %v650_v39 = vmax.f32 %v618_v37, 0.0 }
 0x195   :  { %v663_v40 = vpack.c.bf16 %v650_v39, %v649_v38 }
 0x197   :  { %755 = vmatmul.bf16.gmra.mxu0 %v663_v40 }
 0x198   :  { %v620_v42 = vpop.f32.mrf.mxu3  ;;  %v581_v52 = vpop.f32.mrf.mxu2 }
 0x199   :  { %v621_v45 = vadd.f32 %v620_v42, %v572_v43  ;;  %v582_v63 = vadd.f32 %v1358_v10, %v581_v52 }
 0x19b   :  { %v651_v49 = vmax.f32 %v621_v45, 0.0 }
 0x1a0   :  { %v622_v47 = vpop.f32.mrf.mxu3  ;;  %v583_v60 = vpop.f32.mrf.mxu2 }
 0x1a1   :  { %v623_v48 = vadd.f32 %v622_v47, %v574_v44  ;;  %v584_v1 = vadd.f32 %v1358_v10, %v583_v60 }
 0x1a3   :  { %v652_v50 = vmax.f32 %v623_v48, 0.0 }
 0x1a5   :  { %v664_v9 = vpack.c.bf16 %v652_v50, %v651_v49 }
 0x1a7   :  { %760 = vmatmul.bf16.gmra.mxu0 %v664_v9 }
 0x1a8   :  { %v625_v51 = vpop.f32.mrf.mxu3  ;;  %v586_v0 = vpop.f32.mrf.mxu2 }
 0x1a9   :  { %v626_v55 = vadd.f32 %v625_v51, %v577_v53  ;;  %v587_v29 = vadd.f32 %v1358_v10, %v586_v0 }
 0x1ab   :  { %v653_v58 = vmax.f32 %v626_v55, 0.0 }
 0x1b0   :  { %v627_v56 = vpop.f32.mrf.mxu3  ;;  %v588_v8 = vpop.f32.mrf.mxu2 }
 0x1b1   :  { %v628_v57 = vadd.f32 %v627_v56, %v579_v54  ;;  %v589_v12 = vadd.f32 %v1358_v10, %v588_v8 }
 0x1b3   :  { %v654_v59 = vmax.f32 %v628_v57, 0.0 }
 0x1b5   :  { %v665_v61 = vpack.c.bf16 %v654_v59, %v653_v58 }
 0x1b7   :  { %765 = vmatmul.bf16.gmra.mxu0 %v665_v61 }
 0x1b8   :  { %v630_v62 = vpop.f32.mrf.mxu3  ;;  %v591_v16 = vpop.f32.mrf.mxu2 }
 0x1b9   :  { %v631_v2 = vadd.f32 %v630_v62, %v582_v63  ;;  %v592_v22 = vadd.f32 %v1358_v10, %v591_v16 }
 0x1bb   :  { %v655_v5 = vmax.f32 %v631_v2, 0.0 }
 0x1c0   :  { %v632_v3 = vpop.f32.mrf.mxu3  ;;  %v593_v21 = vpop.f32.mrf.mxu2 }
 0x1c1   :  { %v633_v4 = vadd.f32 %v632_v3, %v584_v1  ;;  %v594_v23 = vadd.f32 %v1358_v10, %v593_v21 }
 0x1c3   :  { %v656_v6 = vmax.f32 %v633_v4, 0.0 }
 0x1c5   :  { %v666_v7 = vpack.c.bf16 %v656_v6, %v655_v5 }
 0x1c7   :  { %770 = vmatmul.bf16.gmra.mxu0 %v666_v7 }
 0x1c8   :  { %v635_v11 = vpop.f32.mrf.mxu3 }
 0x1c9   :  { %v636_v13 = vadd.f32 %v635_v11, %v587_v29 }
 0x1cb   :  { %v657_v17 = vmax.f32 %v636_v13, 0.0 }
 0x1d0   :  { %v637_v14 = vpop.f32.mrf.mxu3 }
 0x1d1   :  { %v638_v15 = vadd.f32 %v637_v14, %v589_v12 }
 0x1d3   :  { %v658_v18 = vmax.f32 %v638_v15, 0.0 }
 0x1d5   :  { %v667_v19 = vpack.c.bf16 %v658_v18, %v657_v17 }
 0x1d7   :  { %775 = vmatmul.bf16.gmra.mxu0 %v667_v19 }
 0x1d8   :  { %v640_v20 = vpop.f32.mrf.mxu3 }
 0x1d9   :  { %v641_v24 = vadd.f32 %v640_v20, %v592_v22 }
 0x1db   :  { %v659_v27 = vmax.f32 %v641_v24, 0.0 }
 0x1e0   :  { %v642_v25 = vpop.f32.mrf.mxu3 }
 0x1e1   :  { %v643_v26 = vadd.f32 %v642_v25, %v594_v23 }
 0x1e3   :  { %v660_v28 = vmax.f32 %v643_v26, 0.0 }
 0x1e5   :  { %v668_v30 = vpack.c.bf16 %v660_v28, %v659_v27 }
 0x1e7   :  { %780 = vmatmul.bf16.gmra.mxu0 %v668_v30 }
 0x1f4   :  { %v746_v32 = vpop.f32.mrf.mxu0 }
 0x1f5   :  { %v747_v33 = vadd.f32 %v1098_v31, %v746_v32 }
 0x1f7   :  { %786 = vst [vmem:[#allocation11] sm:$0xff] %v747_v33 }
 0x1fc   :  { %v748_v34 = vpop.f32.mrf.mxu0 }
 0x1fd   :  { %v749_v35 = vadd.f32 %v1098_v31, %v748_v34 }
 0x1ff   :  { %787 = vst [vmem:[#allocation11 + $0x8] sm:$0xff] %v749_v35 }
 0x204   :  { %v751_v36 = vpop.f32.mrf.mxu0 }
 0x205   :  { %v752_v37 = vadd.f32 %v1098_v31, %v751_v36 }
 0x207   :  { %788 = vst [vmem:[#allocation11 + $0x10] sm:$0xff] %v752_v37 }
 0x20c   :  { %v753_v10 = vpop.f32.mrf.mxu0 }
 0x20d   :  { %v754_v38 = vadd.f32 %v1098_v31, %v753_v10 }
 0x20f   :  { %789 = vst [vmem:[#allocation11 + $0x18] sm:$0xff] %v754_v38 }
 0x214   :  { %v756_v39 = vpop.f32.mrf.mxu0 }
 0x215   :  { %v757_v40 = vadd.f32 %v1098_v31, %v756_v39 }
 0x217   :  { %790 = vst [vmem:[#allocation11 + $0x20] sm:$0xff] %v757_v40 }
 0x21c   :  { %v758_v41 = vpop.f32.mrf.mxu0 }
 0x21d   :  { %v759_v42 = vadd.f32 %v1098_v31, %v758_v41 }
 0x21f   :  { %791 = vst [vmem:[#allocation11 + $0x28] sm:$0xff] %v759_v42 }
 0x224   :  { %v761_v43 = vpop.f32.mrf.mxu0 }
 0x225   :  { %v762_v44 = vadd.f32 %v1098_v31, %v761_v43 }
 0x227   :  { %792 = vst [vmem:[#allocation11 + $0x30] sm:$0xff] %v762_v44 }
 0x22c   :  { %v763_v45 = vpop.f32.mrf.mxu0 }
 0x22d   :  { %v764_v46 = vadd.f32 %v1098_v31, %v763_v45 }
 0x22f   :  { %793 = vst [vmem:[#allocation11 + $0x38] sm:$0xff] %v764_v46 }
 0x234   :  { %v766_v47 = vpop.f32.mrf.mxu0 }
 0x235   :  { %v767_v48 = vadd.f32 %v1098_v31, %v766_v47 }
 0x237   :  { %794 = vst [vmem:[#allocation11 + $0x40] sm:$0xff] %v767_v48 }
 0x23c   :  { %v768_v49 = vpop.f32.mrf.mxu0 }
 0x23d   :  { %v769_v50 = vadd.f32 %v1098_v31, %v768_v49 }
 0x23f   :  { %795 = vst [vmem:[#allocation11 + $0x48] sm:$0xff] %v769_v50 }
 0x244   :  { %v771_v9 = vpop.f32.mrf.mxu0 }
 0x245   :  { %v772_v51 = vadd.f32 %v1098_v31, %v771_v9 }
 0x247   :  { %796 = vst [vmem:[#allocation11 + $0x50] sm:$0xff] %v772_v51 }
 0x24c   :  { %v773_v52 = vpop.f32.mrf.mxu0 }
 0x24d   :  { %v774_v53 = vadd.f32 %v1098_v31, %v773_v52 }
 0x24f   :  { %797 = vst [vmem:[#allocation11 + $0x58] sm:$0xff] %v774_v53 }
 0x254   :  { %v776_v54 = vpop.f32.mrf.mxu0 }
 0x255   :  { %v777_v55 = vadd.f32 %v1098_v31, %v776_v54 }
 0x257   :  { %798 = vst [vmem:[#allocation11 + $0x60] sm:$0xff] %v777_v55 }
 0x25c   :  { %v778_v56 = vpop.f32.mrf.mxu0 }
 0x25d   :  { %v779_v57 = vadd.f32 %v1098_v31, %v778_v56 }
 0x25f   :  { %799 = vst [vmem:[#allocation11 + $0x68] sm:$0xff] %v779_v57 }
 0x264   :  { %v781_v58 = vpop.f32.mrf.mxu0 }
 0x265   :  { %v782_v59 = vadd.f32 %v1098_v31, %v781_v58 }
 0x267   :  { %800 = vst [vmem:[#allocation11 + $0x70] sm:$0xff] %v782_v59 }
 0x26c   :  { %v783_v60 = vpop.f32.mrf.mxu0 }
 0x26d   :  { %v784_v61 = vadd.f32 %v1098_v31, %v783_v60 }
 0x26f   :  { %801 = vst [vmem:[#allocation11 + $0x78] sm:$0xff] %v784_v61 }
 0x270   :  { %814 = dma.vmem_to_hbm [thread:$0]  %s807_s28, 2048, %s809_s10, [#allocation4], %s1252_s29, %s1252_s29, %s1253_s30  }
 0x271   :  { %1249 = dma.done.wait [#allocation4], 2048  }
 0x272   :  { %1250 = vsyncadd [#allocation4], 4294965248 }
 0x273   :  { %819 = vsyncpa [#allocation3], 1 }
 0x274   :  { %820 = vsyncpa [#allocation6], 1 }
 0x275   :  { %821 = vsyncpa [#allocation9], 1 }
 0x276   :  { %822 = vsyncpa [#allocation4], 1 }

</bundles_post_ra>
